<compile_context>
chip_gen: v6e
topology: v6e:2x2x1
jax: 0.10.0
libtpu: 0.0.40
codegen_flags: <defaults>
</compile_context>

<pallas_src>
import functools

import jax
import jax.numpy as jnp
from jax.experimental import pallas as pl
from jax.experimental.pallas import tpu as pltpu


def _round_up(x, m):
    return (x + m - 1) // m * m


def _update_u_kernel_direct(batch_ref, v_ref, u_ref, o_ref):
    """f32 output: accumulate straight into the resident output block."""
    i = pl.program_id(1)  # reduction axis over node tiles (last grid axis)

    @pl.when(i == 0)
    def _():
        o_ref[...] = u_ref[...].astype(o_ref.dtype)

    num_seg = o_ref.shape[0]
    tile_n = v_ref.shape[0]
    b_row = batch_ref[...]                                              # (1, tile_n) int32, lane-major
    seg_ids = jax.lax.broadcasted_iota(jnp.int32, (num_seg, tile_n), 0)
    onehot = (seg_ids == b_row).astype(v_ref.dtype)                     # (B, tile_n): no transpose needed
    o_ref[...] += jnp.dot(onehot, v_ref[...],
                          preferred_element_type=jnp.float32)


def _update_u_kernel_scratch(batch_ref, v_ref, u_ref, o_ref, acc_ref):
    """sub-f32 output: keep an f32 accumulator, cast once on the last step."""
    i = pl.program_id(1)

    @pl.when(i == 0)
    def _():
        acc_ref[...] = u_ref[...].astype(jnp.float32)

    num_seg = acc_ref.shape[0]
    tile_n = v_ref.shape[0]
    b_row = batch_ref[...]
    seg_ids = jax.lax.broadcasted_iota(jnp.int32, (num_seg, tile_n), 0)
    onehot = (seg_ids == b_row).astype(v_ref.dtype)
    acc_ref[...] += jnp.dot(onehot, v_ref[...],
                            preferred_element_type=jnp.float32)

    @pl.when(i == pl.num_programs(1) - 1)
    def _():
        o_ref[...] = acc_ref[...].astype(o_ref.dtype)


@functools.partial(jax.jit, static_argnames=("tile_n", "tile_f"))
def update_u(u, v, batch, *, tile_n=512, tile_f=512):
    """Functional equivalent of `u += scatter_sum(v, batch, dim=0)`.

    Note: out-of-range batch ids are silently dropped (zero one-hot row),
    matching jax.ops.segment_sum semantics. # TODO(synk): torch_scatter would
    index OOB instead; not reproducible (nor desirable) on TPU.
    """
    B, F = u.shape
    N, Fv = v.shape
    assert Fv == F and batch.shape == (N,)
    out_dtype = u.dtype

    # --- pad to TPU-friendly shapes (lane = 128, sublane = 8/16) -------------
    sub = 8 if jnp.dtype(out_dtype).itemsize >= 4 else 16
    B_pad = _round_up(B, sub)

    F_pad = _round_up(F, 128)
    tile_f = min(tile_f, F_pad)
    while F_pad % tile_f:                 # shrink tile_f to a 128-multiple divisor of F_pad
        tile_f -= 128

    tile_n = min(tile_n, _round_up(N, 128))
    N_pad = _round_up(N, tile_n)          # pad nodes up to a whole tile (<= tile_n-1 extra rows)

    u_p = jnp.zeros((B_pad, F_pad), dtype=u.dtype).at[:B, :F].set(u)
    v_p = jnp.zeros((N_pad, F_pad), dtype=v.dtype).at[:N, :F].set(v)
    # Padded node rows get an out-of-range segment id -> all-zero one-hot column.
    batch_p = jnp.full((1, N_pad), B_pad, dtype=jnp.int32).at[0, :N].set(
        batch.astype(jnp.int32))

    grid = (F_pad // tile_f, N_pad // tile_n)   # (parallel F tiles, reduction N tiles)

    in_specs = [
        pl.BlockSpec((1, tile_n), lambda j, i: (0, i)),        # batch ids, lane-major
        pl.BlockSpec((tile_n, tile_f), lambda j, i: (i, j)),   # v tile
        pl.BlockSpec((B_pad, tile_f), lambda j, i: (0, j)),    # u (resident per F tile)
    ]
    out_specs = pl.BlockSpec((B_pad, tile_f), lambda j, i: (0, j))

    if out_dtype == jnp.float32:
        kernel = _update_u_kernel_direct
        scratch_shapes = []                # accumulate directly in the resident out block
    else:
        kernel = _update_u_kernel_scratch
        scratch_shapes = [pltpu.VMEM((B_pad, tile_f), jnp.float32)]

    out_p = pl.pallas_call(
        kernel,
        out_shape=jax.ShapeDtypeStruct((B_pad, F_pad), out_dtype),
        grid_spec=pltpu.PrefetchScalarGridSpec(
            num_scalar_prefetch=0,
            grid=grid,
            in_specs=in_specs,
            out_specs=out_specs,
            scratch_shapes=scratch_shapes,
        ),
        compiler_params=pltpu.CompilerParams(
            dimension_semantics=("parallel", "arbitrary")),
    )(batch_p, v_p, u_p)

    return out_p[:B, :F]


if __name__ == "__main__":
    key = jax.random.PRNGKey(0)
    k_u, k_v, k_b = jax.random.split(key, 3)

    B, N, F = 2, 16, 32                      # 2 graphs, 16 nodes total, 32 features
    u = jax.random.normal(k_u, (B, F), dtype=jnp.float32)
    v = jax.random.normal(k_v, (N, F), dtype=jnp.float32)
    batch = jax.random.randint(k_b, (N,), 0, B, dtype=jnp.int32)

    # f32 path (direct accumulation into the output block)
    out = jax.block_until_ready(update_u(u, v, batch))
    ref = u + jax.ops.segment_sum(v, batch, num_segments=B)
    assert jnp.allclose(out, ref, atol=1e-5, rtol=1e-5), "f32 mismatch vs reference"

    # bf16 path (f32 scratch accumulator, single final cast)
    u16, v16 = u.astype(jnp.bfloat16), v.astype(jnp.bfloat16)
    out16 = jax.block_until_ready(update_u(u16, v16, batch))
    ref16 = (u16.astype(jnp.float32)
             + jax.ops.segment_sum(v16.astype(jnp.float32), batch, num_segments=B)
             ).astype(jnp.bfloat16)
    assert jnp.allclose(out16.astype(jnp.float32), ref16.astype(jnp.float32),
                        atol=0.1, rtol=0.05), "bf16 mismatch vs reference"

    print("KERNEL_OK")
</pallas_src>

<mosaic_0001>
module attributes {stable_mosaic.version = 11 : i64} {
  func.func @_update_u_kernel_direct(%arg0: i32, %arg1: i32, %arg2: memref<1x128xi32, #tpu.memory_space<vmem>>, %arg3: memref<128x128xf32, #tpu.memory_space<vmem>>, %arg4: memref<8x128xf32, #tpu.memory_space<vmem>>, %arg5: memref<8x128xf32, #tpu.memory_space<vmem>>) attributes {dimension_semantics = [#tpu.dimension_semantics<parallel>, #tpu.dimension_semantics<arbitrary>], iteration_bounds = array<i64: 1, 1>, scalar_prefetch = 0 : i64, scratch_operands = 0 : i64, tpu.core_type = #tpu.core_type<tc>, window_params = [{transform_indices = @transform_0, window_bounds = array<i64: 1, 128>}, {transform_indices = @transform_1, window_bounds = array<i64: 128, 128>}, {transform_indices = @transform_2, window_bounds = array<i64: 8, 128>}, {transform_indices = @transform_3, window_bounds = array<i64: 8, 128>}]} {
    %c0_i32 = arith.constant 0 : i32
    %0 = arith.cmpi eq, %arg1, %c0_i32 : i32
    %1 = arith.extui %0 : i1 to i32
    %c0_i32_0 = arith.constant 0 : i32
    %2 = arith.cmpi ne, %1, %c0_i32_0 : i32
    scf.if %2 {
      %c0_8 = arith.constant 0 : index
      %c0_9 = arith.constant 0 : index
      %14 = vector.load %arg4[%c0_8, %c0_9] : memref<8x128xf32, #tpu.memory_space<vmem>>, vector<8x128xf32>
      %c0_10 = arith.constant 0 : index
      %c0_11 = arith.constant 0 : index
      %15 = vector.load %arg5[%c0_10, %c0_11] : memref<8x128xf32, #tpu.memory_space<vmem>>, vector<8x128xf32>
      tpu.vector_store %arg5[%c0_10, %c0_11], %14 {strides = array<i32>} : memref<8x128xf32, #tpu.memory_space<vmem>>, vector<8x128xf32>,
    } else {
    }
    %c0 = arith.constant 0 : index
    %c0_1 = arith.constant 0 : index
    %3 = vector.load %arg2[%c0, %c0_1] : memref<1x128xi32, #tpu.memory_space<vmem>>, vector<1x128xi32>
    %4 = tpu.iota {dimensions = array<i32: 0>} : vector<8x128xi32>
    %5 = vector.broadcast %3 : vector<1x128xi32> to vector<8x128xi32>
    %6 = arith.cmpi eq, %4, %5 : vector<8x128xi32>
    %7 = arith.extui %6 : vector<8x128xi1> to vector<8x128xi32>
    %8 = arith.sitofp %7 : vector<8x128xi32> to vector<8x128xf32>
    %c0_2 = arith.constant 0 : index
    %c0_3 = arith.constant 0 : index
    %9 = vector.load %arg5[%c0_2, %c0_3] : memref<8x128xf32, #tpu.memory_space<vmem>>, vector<8x128xf32>
    %c0_4 = arith.constant 0 : index
    %c0_5 = arith.constant 0 : index
    %10 = vector.load %arg3[%c0_4, %c0_5] : memref<128x128xf32, #tpu.memory_space<vmem>>, vector<128x128xf32>
    %cst = arith.constant dense<0.000000e+00> : vector<8x128xf32>
    %11 = tpu.matmul %8, %10, %cst {dimension_numbers = #tpu.dot_dimension_numbers<[1], [0], [0], [1], [0, 0, 1, 1], [], []>} : vector<8x128xf32>, vector<128x128xf32>, vector<8x128xf32> -> vector<8x128xf32>
    %12 = arith.addf %9, %11 : vector<8x128xf32>
    %c0_6 = arith.constant 0 : index
    %c0_7 = arith.constant 0 : index
    %13 = vector.load %arg5[%c0_6, %c0_7] : memref<8x128xf32, #tpu.memory_space<vmem>>, vector<8x128xf32>
    tpu.vector_store %arg5[%c0_6, %c0_7], %12 {strides = array<i32>} : memref<8x128xf32, #tpu.memory_space<vmem>>, vector<8x128xf32>,
    return
  }
  func.func @transform_0(%arg0: i32, %arg1: i32) -> (i32, i32) {
    %c0_i32 = arith.constant 0 : i32
    %c0_i32_0 = arith.constant 0 : i32
    return %c0_i32, %arg1 : i32, i32
  }
  func.func @transform_1(%arg0: i32, %arg1: i32) -> (i32, i32) {
    %c0_i32 = arith.constant 0 : i32
    return %arg1, %arg0 : i32, i32
  }
  func.func @transform_2(%arg0: i32, %arg1: i32) -> (i32, i32) {
    %c0_i32 = arith.constant 0 : i32
    %c0_i32_0 = arith.constant 0 : i32
    return %c0_i32, %arg0 : i32, i32
  }
  func.func @transform_3(%arg0: i32, %arg1: i32) -> (i32, i32) {
    %c0_i32 = arith.constant 0 : i32
    %c0_i32_0 = arith.constant 0 : i32
    return %c0_i32, %arg0 : i32, i32
  }
}

</mosaic_0001>

<bundles_post_ra>
// kernel: update_u.1
= control target key start
LH: loop header
LB: loop body
LE: loop exit
PB: predicated region body
PF: predicated region fallthrough
CT: control target
= control target key end

     0   :  { %v181_v0 = vmov 0.0   ;;  %vm182_vm0 = vmmov 0   ;;  %v21_v13 = vlaneseq  ;;  %v183_v20 = vmov 1.0   ;;  %s261_s1 = inlined_call_operand.vmem [shape: f32[128,128], index: 1, kind: input, shape index: {}]   ;;  %s262_s0 = inlined_call_operand.vmem [shape: s32[1,128], index: 0, kind: input, shape index: {}]   ;;  %s263_s2 = inlined_call_operand.vmem [shape: f32[8,128], index: 2, kind: input, shape index: {}]   ;;  %s264_s3 = inlined_call_operand.vmem [shape: f32[8,128], index: 3, kind: output, shape index: {}]  }
   0x1   :  { %143 = vmatprep.subr.mxu0 %v181_v0  ;;  %v46_v1 = vld [vmem:[%s261_s1 + $0x78] sm:$0xff]  ;;  %v45_v2 = vld [vmem:[%s261_s1 + $0x70] sm:$0xff]  ;;  %175 = vmatprep.mubr.msk.f32.mxu0 %vm182_vm0, %v181_v0  ;;  %v44_v3 = vld [vmem:[%s261_s1 + $0x68] sm:$0xff] }
   0x2   :  { %144 = vmatpush3.msra.mxu0 %v46_v1  ;;  %v43_v4 = vld [vmem:[%s261_s1 + $0x60] sm:$0xff]  ;;  %v42_v5 = vld [vmem:[%s261_s1 + $0x58] sm:$0xff]  ;;  %v41_v6 = vld [vmem:[%s261_s1 + $0x50] sm:$0xff]  ;;  %v22_v16 = vshrl.u32 %v21_v13, 7 }
   0x3   :  { %145 = vmatprep.subr.mxu0 %v181_v0  ;;  %v40_v7 = vld [vmem:[%s261_s1 + $0x48] sm:$0xff]  ;;  %v39_v8 = vld [vmem:[%s261_s1 + $0x40] sm:$0xff]  ;;  %v38_v9 = vld [vmem:[%s261_s1 + $0x38] sm:$0xff] }
   0x4   :  { %146 = vmatpush3.msra.mxu0 %v45_v2  ;;  %v37_v10 = vld [vmem:[%s261_s1 + $0x30] sm:$0xff]  ;;  %v36_v11 = vld [vmem:[%s261_s1 + $0x28] sm:$0xff]  ;;  %v35_v12 = vld [vmem:[%s261_s1 + $0x20] sm:$0xff] }
   0x5   :  { %147 = vmatprep.subr.mxu0 %v181_v0  ;;  %v34_v14 = vld [vmem:[%s261_s1 + $0x18] sm:$0xff]  ;;  %v33_v15 = vld [vmem:[%s261_s1 + $0x10] sm:$0xff]  ;;  %v32_v17 = vld [vmem:[%s261_s1 + $0x8] sm:$0xff] }
   0x6   :  { %148 = vmatpush3.msra.mxu0 %v44_v3  ;;  %v123_v18 = vld [vmem:[%s262_s0] ss:$0 sm:$0xff] }
   0x7   :  { %149 = vmatprep.subr.mxu0 %v181_v0  ;;  %v31_v19 = vld [vmem:[%s261_s1] sm:$0xff]  ;;  %vm27_vm1 = vcmp.eq.s32.totalorder %v22_v16, %v123_v18 }
   0x8   :  { %150 = vmatpush3.msra.mxu0 %v43_v4  ;;  %v18_v21 = vld [vmem:[%s263_s2] sm:$0xff] }
   0x9   :  { %151 = vmatprep.subr.mxu0 %v181_v0 }
   0xa   :  { %152 = vmatpush3.msra.mxu0 %v42_v5 }
   0xb   :  { %153 = vmatprep.subr.mxu0 %v181_v0 }
   0xc   :  { %154 = vmatpush3.msra.mxu0 %v41_v6 }
   0xd   :  { %155 = vmatprep.subr.mxu0 %v181_v0 }
   0xe   :  { %156 = vmatpush3.msra.mxu0 %v40_v7 }
   0xf   :  { %157 = vmatprep.subr.mxu0 %v181_v0 }
  0x10   :  { %158 = vmatpush3.msra.mxu0 %v39_v8 }
  0x11   :  { %159 = vmatprep.subr.mxu0 %v181_v0 }
  0x12   :  { %160 = vmatpush3.msra.mxu0 %v38_v9 }
  0x13   :  { %161 = vmatprep.subr.mxu0 %v181_v0 }
  0x14   :  { %162 = vmatpush3.msra.mxu0 %v37_v10 }
  0x15   :  { %163 = vmatprep.subr.mxu0 %v181_v0 }
  0x16   :  { %164 = vmatpush3.msra.mxu0 %v36_v11 }
  0x17   :  { %165 = vmatprep.subr.mxu0 %v181_v0 }
  0x18   :  { %166 = vmatpush3.msra.mxu0 %v35_v12 }
  0x19   :  { %167 = vmatprep.subr.mxu0 %v181_v0 }
  0x1a   :  { %168 = vmatpush3.msra.mxu0 %v34_v14 }
  0x1b   :  { %169 = vmatprep.subr.mxu0 %v181_v0 }
  0x1c   :  { %170 = vmatpush3.msra.mxu0 %v33_v15 }
  0x1d   :  { %171 = vmatprep.subr.mxu0 %v181_v0 }
  0x1e   :  { %172 = vmatpush3.msra.mxu0 %v32_v17 }
  0x1f   :  { %173 = vmatprep.subr.mxu0 %v181_v0 }
  0x20   :  { %174 = vmatpush3.msra.mxu0 %v31_v19 }
  0x21   :  { %176 = vmatmul.mubr.msk.f32.vlgmr.msra.gmra.mxu0 %vm27_vm1, %v183_v20 }
  0xe1   :  { %v113_v22 = vpop.f32.mrf.mxu0 }
  0xe2   :  { %v117_v23 = vadd.f32 %v113_v22, %v18_v21 }
  0xe3   :  { %v177_v24 = vpop.f32.mrf.mxu0 }
  0xe4   :  { %118 = vst [vmem:[%s264_s3] sm:$0xff] %v117_v23 }

</bundles_post_ra>
